<compile_context>
chip_gen: v7x
topology: tpu7x:2x2x1
jax: 0.10.0
libtpu: 0.0.40
codegen_flags: <defaults>
</compile_context>

<pallas_src>
import functools
import math

import jax
import jax.numpy as jnp
from jax.experimental import pallas as pl
from jax.experimental.pallas import tpu as pltpu

_LANE = 128


def _round_up(x, m):
    return ((x + m - 1) // m) * m


@functools.lru_cache(maxsize=1)
def _device_info():
    """(physical_vmem_bytes, is_v7x, is_v5e) -- best effort, with safe fallbacks."""
    kind = ""
    try:
        kind = jax.devices()[0].device_kind.lower()
    except Exception:
        pass
    is_v7x = "7" in kind
    is_v5e = ("v5 lite" in kind) or ("v5e" in kind) or ("v5lite" in kind)
    vmem = None
    try:
        vmem = getattr(pltpu.get_tpu_info(), "vmem_capacity_bytes", None)
    except Exception:
        vmem = None
    if not vmem:
        vmem = (64 << 20) if is_v7x else (128 << 20)
    return int(vmem), is_v7x, is_v5e


# ----------------------------------------------------------------------------- GELU (exact erf)
# XLA's f32 erf expansion: erf(x) ~= x * A(x^2) / B(x^2), with |x| clamped to the point where
# erf rounds to +/-1 in f32.  Divide/exp-free except for a single reciprocal.
_ERF_ALPHA = (2.2905065861350646e-04, 3.4082910107109506e-03, 5.0955695062380861e-02,
              1.8520832239976145e-01, 1.1283791435190840e+00)
_ERF_BETA = (-1.1791602954361697e-07, 2.3547966471313185e-05, 1.0179625278914885e-03,
             1.4070470171167667e-02, 1.1098505178285362e-01, 4.9746925110067538e-01,
             1.0)
_ERF_CLAMP = 3.832506856900711


def _polyval(coeffs, x):
    acc = jnp.full_like(x, coeffs[0])
    for c in coeffs[1:]:
        acc = acc * x + c
    return acc


def _erf(x):
    x = jnp.clip(x, -_ERF_CLAMP, _ERF_CLAMP)
    x2 = x * x
    num = x * _polyval(_ERF_ALPHA, x2)
    den = _polyval(_ERF_BETA, x2)
    return num * pl.reciprocal(den, approx=False)


def _gelu_exact(x):
    # PyTorch F.gelu default (approximate='none'): 0.5 * x * (1 + erf(x / sqrt(2)))
    return 0.5 * x * (1.0 + _erf(x * (1.0 / math.sqrt(2.0))))


# ----------------------------------------------------------------------------- kernels
def _mlp_kernel_resident(x_ref, w1_ref, b1_ref, w2_ref, b2_ref, o_ref):
    """Fully-resident weights: one row tile per grid step."""
    b1 = b1_ref[...].astype(jnp.float32)
    b2 = b2_ref[...].astype(jnp.float32)

    h = jnp.dot(x_ref[...], w1_ref[...], preferred_element_type=jnp.float32) + b1
    h = _gelu_exact(h)                         # dropout -> identity (eval mode)
    h = h.astype(w2_ref.dtype)                 # feed MXU at native rate (no-op for f32)

    y = jnp.dot(h, w2_ref[...], preferred_element_type=jnp.float32) + b2
    y = _gelu_exact(y)                         # dropout -> identity (eval mode)
    o_ref[...] = y.astype(o_ref.dtype)


def _mlp_kernel_tiled(x_ref, w1_ref, b1_ref, w2_ref, b2_ref, o_ref, acc_ref):
    """Weight-tiled path: innermost grid axis walks h0 column blocks, f32 scratch accumulator."""
    k = pl.program_id(1)

    @pl.when(k == 0)
    def _():
        acc_ref[...] = jnp.zeros_like(acc_ref)

    b1 = b1_ref[...].astype(jnp.float32)
    h = jnp.dot(x_ref[...], w1_ref[...], preferred_element_type=jnp.float32) + b1
    h = _gelu_exact(h).astype(w2_ref.dtype)
    acc_ref[...] += jnp.dot(h, w2_ref[...], preferred_element_type=jnp.float32)

    @pl.when(k == pl.num_programs(1) - 1)
    def _():
        y = _gelu_exact(acc_ref[...] + b2_ref[...].astype(jnp.float32))
        o_ref[...] = y.astype(o_ref.dtype)


# ----------------------------------------------------------------------------- pallas_call wrapper
@functools.partial(jax.jit, static_argnames=("tm", "tk", "single_buffer_weights"))
def _mlp_pallas(xp, w1p, b1p, w2p, b2p, *, tm, tk, single_buffer_weights):
    n_pad, d_pad = xp.shape
    h0_pad, h1_pad = w1p.shape[1], w2p.shape[1]
    itemsize = jnp.dtype(xp.dtype).itemsize
    w_itemsize = jnp.dtype(w1p.dtype).itemsize
    vmem_cap, _, _ = _device_info()
    vmem_ceiling = int(vmem_cap * 0.8)         # headroom for Mosaic internal scratch

    def _const_spec(shape, index_map):
        # Constant index_map => double-buffering buys nothing; single buffer halves footprint.
        if single_buffer_weights:
            return pl.BlockSpec(shape, index_map, pipeline_mode=pl.Buffered(1))
        return pl.BlockSpec(shape, index_map)

    if tk == 0:
        # Fully-resident weights, 1-D grid over row tiles.
        grid = (n_pad // tm,)
        in_specs = [
            pl.BlockSpec((tm, d_pad), lambda i: (i, 0)),
            _const_spec((d_pad, h0_pad), lambda i: (0, 0)),
            _const_spec((1, h0_pad), lambda i: (0, 0)),
            _const_spec((h0_pad, h1_pad), lambda i: (0, 0)),
            _const_spec((1, h1_pad), lambda i: (0, 0)),
        ]
        out_specs = pl.BlockSpec((tm, h1_pad), lambda i: (i, 0))
        scratch_shapes = ()
        kernel = _mlp_kernel_resident
        dim_sem = ("parallel",)
        weight_bufs = 1 if single_buffer_weights else 2
        est_bytes = (
            2 * tm * (d_pad + h1_pad) * itemsize
            + weight_bufs * (d_pad * h0_pad + h0_pad * h1_pad + h0_pad + h1_pad) * w_itemsize
            + 5 * tm * (h0_pad + h1_pad) * 4   # live f32 GELU temporaries (rational erf)
        )
    else:
        # Weight-tiled path: second, innermost, "arbitrary" axis over h0 blocks.
        grid = (n_pad // tm, h0_pad // tk)
        in_specs = [
            pl.BlockSpec((tm, d_pad), lambda i, k: (i, 0)),   # x stays resident across k
            pl.BlockSpec((d_pad, tk), lambda i, k: (0, k)),
            pl.BlockSpec((1, tk), lambda i, k: (0, k)),
            pl.BlockSpec((tk, h1_pad), lambda i, k: (k, 0)),
            _const_spec((1, h1_pad), lambda i, k: (0, 0)),
        ]
        out_specs = pl.BlockSpec((tm, h1_pad), lambda i, k: (i, 0))
        scratch_shapes = (pltpu.VMEM((tm, h1_pad), jnp.float32),)
        kernel = _mlp_kernel_tiled
        dim_sem = ("parallel", "arbitrary")
        est_bytes = (
            2 * tm * (d_pad + h1_pad) * itemsize
            + 2 * (d_pad * tk + tk * h1_pad + tk) * w_itemsize   # double-buffered W1/W2/b1 slabs
            + h1_pad * w_itemsize
            + tm * h1_pad * 4                                     # f32 accumulator scratch
            + 5 * tm * (tk + h1_pad) * 4                          # live f32 GELU temporaries
        )

    vmem_limit = int(min(max(int(est_bytes * 1.5), 32 << 20), vmem_ceiling))

    cost = pl.CostEstimate(
        flops=2 * n_pad * (d_pad * h0_pad + h0_pad * h1_pad),
        transcendentals=n_pad * (h0_pad + h1_pad),   # 1 reciprocal / element / layer
        bytes_accessed=(xp.size * itemsize
                        + (w1p.size + b1p.size + w2p.size + b2p.size) * w_itemsize
                        + n_pad * h1_pad * itemsize),
    )

    return pl.pallas_call(
        kernel,
        out_shape=jax.ShapeDtypeStruct((n_pad, h1_pad), xp.dtype),
        grid_spec=pltpu.PrefetchScalarGridSpec(
            num_scalar_prefetch=0,
            grid=grid,
            in_specs=in_specs,
            out_specs=out_specs,
            scratch_shapes=scratch_shapes,
        ),
        compiler_params=pltpu.CompilerParams(
            dimension_semantics=dim_sem,
            vmem_limit_bytes=vmem_limit,
        ),
        cost_estimate=cost,
    )(xp, w1p, b1p, w2p, b2p)


# ----------------------------------------------------------------------------- host-side helpers
def _pad_to(a, rows, cols):
    pr, pc = rows - a.shape[0], cols - a.shape[1]
    if pr or pc:
        a = jnp.pad(a, ((0, pr), (0, pc)))
    return a


def prepare_mlp_params(w1, b1, w2, b2):
    """Pad weights/biases to lane-dense (128-multiple) shapes ONCE, outside the hot path.

    w1: [d_in, h0], b1: [h0], w2: [h0, h1], b2: [h1] (nn.Linear weights pre-transposed).
    Zero padding is mathematically inert (padded columns get zero bias and GELU(0) == 0).
    """
    d_in, h0 = w1.shape
    h1 = w2.shape[1]
    d_pad = _round_up(d_in, _LANE)
    h0_pad = _round_up(h0, _LANE)
    h1_pad = _round_up(h1, _LANE)
    w1p = _pad_to(w1, d_pad, h0_pad)
    b1p = _pad_to(b1.reshape(1, -1), 1, h0_pad)
    w2p = _pad_to(w2, h0_pad, h1_pad)
    b2p = _pad_to(b2.reshape(1, -1), 1, h1_pad)
    return (w1p, b1p, w2p, b2p), (d_in, h0, h1)


def _choose_rows(n_rows, align, tm_max, split_two):
    """Pick (row_tile, padded_rows): sublane-aligned; split into two tiles only when the
    'parallel' row axis can actually be sharded across two TensorCores (v7x)."""
    n_al = _round_up(n_rows, align)
    tm_max = max(align, _round_up(tm_max, align))
    if n_al <= tm_max:
        if split_two and n_al >= 2 * align:
            tm = _round_up((n_al + 1) // 2, align)
            return tm, 2 * tm
        return n_al, n_al
    return tm_max, _round_up(n_al, tm_max)


def mlp_forward(x, padded_params, dims, *, tm_max=512, force_weight_tiling=False, tk=None):
    """Eval-mode MLP forward: x [..., d_in] -> [..., h1], with pre-padded params."""
    w1p, b1p, w2p, b2p = padded_params
    d_in, h0, h1 = dims
    assert x.shape[-1] == d_in

    orig_lead = x.shape[:-1]
    x2d = x.reshape(-1, d_in)
    n = x2d.shape[0]
    d_pad, h0_pad = w1p.shape
    h1_pad = w2p.shape[1]

    vmem_cap, is_v7x, _ = _device_info()
    itemsize = jnp.dtype(x.dtype).itemsize
    align = 8 if itemsize >= 4 else 16         # sublane alignment (f32 vs bf16 packing)
    tm, n_pad = _choose_rows(n, align, tm_max, split_two=is_v7x)

    pad_r, pad_c = n_pad - n, d_pad - d_in
    if pad_r or pad_c:                          # skipped entirely when already aligned
        x2d = jnp.pad(x2d, ((0, pad_r), (0, pad_c)))

    # Weight-tiling fallback when resident weights would eat too much VMEM.
    w_itemsize = jnp.dtype(w1p.dtype).itemsize
    weight_bytes = (w1p.size + b1p.size + w2p.size + b2p.size) * w_itemsize
    if force_weight_tiling or weight_bytes > int(vmem_cap * 0.4):
        if tk is None:
            per_col = 2 * (d_pad + h1_pad) * w_itemsize     # double-buffered W1/W2 slabs
            tk = (int(vmem_cap * 0.25) // max(per_col, 1)) // _LANE * _LANE
        tk = min(max(_LANE, (int(tk) // _LANE) * _LANE), h0_pad)
        while h0_pad % tk:                       # 128 always divides h0_pad
            tk -= _LANE
    else:
        tk = 0

    try:
        out = _mlp_pallas(x2d, w1p, b1p, w2p, b2p, tm=tm, tk=tk,
                          single_buffer_weights=True)
    except Exception:
        # Conservative fallback if single-buffered (Buffered(1)) weight specs are rejected.
        out = _mlp_pallas(x2d, w1p, b1p, w2p, b2p, tm=tm, tk=tk,
                          single_buffer_weights=False)

    if n_pad != n or h1_pad != h1:
        out = out[:n, :h1]
    return out.reshape(*orig_lead, h1)


# ----------------------------------------------------------------------------- init & reference
def init_mlp_params(key, input_dim, hidden_units, dtype=jnp.float32):
    """Deterministic init mimicking nn.Linear's uniform(-1/sqrt(fan_in), 1/sqrt(fan_in))."""
    k1, k2, k3, k4 = jax.random.split(key, 4)
    h0, h1 = hidden_units
    lim1 = 1.0 / math.sqrt(input_dim)
    lim2 = 1.0 / math.sqrt(h0)
    w1 = jax.random.uniform(k1, (input_dim, h0), dtype, -lim1, lim1)
    b1 = jax.random.uniform(k2, (h0,), dtype, -lim1, lim1)
    w2 = jax.random.uniform(k3, (h0, h1), dtype, -lim2, lim2)
    b2 = jax.random.uniform(k4, (h1,), dtype, -lim2, lim2)
    return w1, b1, w2, b2


def _reference_mlp(x, w1, b1, w2, b2):
    # Pure-JAX reference of the PyTorch forward (eval mode), exact erf-based GELU.
    hp = jax.lax.Precision.HIGHEST
    h = jax.nn.gelu(jnp.dot(x, w1, precision=hp) + b1, approximate=False)
    y = jax.nn.gelu(jnp.dot(h, w2, precision=hp) + b2, approximate=False)
    return y


if __name__ == "__main__":
    key = jax.random.PRNGKey(0)

    def _check(x, w1, b1, w2, b2, **kw):
        params, dims = prepare_mlp_params(w1, b1, w2, b2)
        out = jax.block_until_ready(mlp_forward(x, params, dims, **kw))
        ref = _reference_mlp(x.reshape(-1, x.shape[-1]), w1, b1, w2, b2)
        ref = ref.reshape(*x.shape[:-1], w2.shape[1])
        assert out.shape == ref.shape, (out.shape, ref.shape)
        # Tolerance covers possible bf16-pass differences between MXU and the HIGHEST reference.
        assert jnp.allclose(out, ref, atol=2e-3, rtol=2e-3), \
            float(jnp.max(jnp.abs(out - ref)))

    # 1) Module spec config (input_dim=32, hidden_units=(64, 32)): resident-weights path.
    kx, kp = jax.random.split(key)
    x = jax.random.normal(kx, (2, 8, 32), jnp.float32)
    w1, b1, w2, b2 = init_mlp_params(kp, 32, (64, 32))
    _check(x, w1, b1, w2, b2)

    # 2) Weight-tiled accumulation path (forced, two h0 blocks of 128).
    kx2, kp2 = jax.random.split(jax.random.fold_in(key, 1))
    x2 = jax.random.normal(kx2, (2, 8, 32), jnp.float32)
    w1b, b1b, w2b, b2b = init_mlp_params(kp2, 32, (256, 32))
    _check(x2, w1b, b1b, w2b, b2b, force_weight_tiling=True, tk=128)

    # 3) Already lane/sublane-aligned shapes: no padding or slicing anywhere.
    kx3, kp3 = jax.random.split(jax.random.fold_in(key, 2))
    x3 = jax.random.normal(kx3, (1, 8, 128), jnp.float32)
    w1c, b1c, w2c, b2c = init_mlp_params(kp3, 128, (128, 128))
    _check(x3, w1c, b1c, w2c, b2c)

    print("KERNEL_OK")
</pallas_src>

<mosaic_0001>
module attributes {stable_mosaic.version = 11 : i64} {
  func.func @_mlp_kernel_resident(%arg0: i32, %arg1: memref<16x128xf32, #tpu.memory_space<vmem>>, %arg2: memref<128x128xf32, #tpu.memory_space<vmem>>, %arg3: memref<1x128xf32, #tpu.memory_space<vmem>>, %arg4: memref<128x128xf32, #tpu.memory_space<vmem>>, %arg5: memref<1x128xf32, #tpu.memory_space<vmem>>, %arg6: memref<16x128xf32, #tpu.memory_space<vmem>>) attributes {dimension_semantics = [#tpu.dimension_semantics<parallel>], iteration_bounds = array<i64: 1>, scalar_prefetch = 0 : i64, scratch_operands = 0 : i64, tpu.core_type = #tpu.core_type<tc>, window_params = [{transform_indices = @transform_0, window_bounds = array<i64: 16, 128>}, {pipeline_mode = #tpu.pipeline_mode<synchronous>, transform_indices = @transform_1, window_bounds = array<i64: 128, 128>}, {pipeline_mode = #tpu.pipeline_mode<synchronous>, transform_indices = @transform_2, window_bounds = array<i64: 1, 128>}, {pipeline_mode = #tpu.pipeline_mode<synchronous>, transform_indices = @transform_3, window_bounds = array<i64: 128, 128>}, {pipeline_mode = #tpu.pipeline_mode<synchronous>, transform_indices = @transform_4, window_bounds = array<i64: 1, 128>}, {transform_indices = @transform_5, window_bounds = array<i64: 16, 128>}]} {
    %c0 = arith.constant 0 : index
    %c0_0 = arith.constant 0 : index
    %0 = vector.load %arg3[%c0, %c0_0] : memref<1x128xf32, #tpu.memory_space<vmem>>, vector<1x128xf32>
    %c0_1 = arith.constant 0 : index
    %c0_2 = arith.constant 0 : index
    %1 = vector.load %arg5[%c0_1, %c0_2] : memref<1x128xf32, #tpu.memory_space<vmem>>, vector<1x128xf32>
    %c0_3 = arith.constant 0 : index
    %c0_4 = arith.constant 0 : index
    %2 = vector.load %arg1[%c0_3, %c0_4] : memref<16x128xf32, #tpu.memory_space<vmem>>, vector<16x128xf32>
    %c0_5 = arith.constant 0 : index
    %c0_6 = arith.constant 0 : index
    %3 = vector.load %arg2[%c0_5, %c0_6] : memref<128x128xf32, #tpu.memory_space<vmem>>, vector<128x128xf32>
    %cst = arith.constant dense<0.000000e+00> : vector<16x128xf32>
    %4 = tpu.matmul %2, %3, %cst {dimension_numbers = #tpu.dot_dimension_numbers<[1], [0], [0], [1], [0, 0, 1, 1], [], []>} : vector<16x128xf32>, vector<128x128xf32>, vector<16x128xf32> -> vector<16x128xf32>
    %5 = vector.broadcast %0 : vector<1x128xf32> to vector<16x128xf32>
    %6 = arith.addf %4, %5 : vector<16x128xf32>
    %cst_7 = arith.constant 5.000000e-01 : f32
    %7 = vector.broadcast %cst_7 : f32 to vector<16x128xf32>
    %8 = arith.mulf %7, %6 : vector<16x128xf32>
    %cst_8 = arith.constant 0.707106769 : f32
    %9 = vector.broadcast %cst_8 : f32 to vector<16x128xf32>
    %10 = arith.mulf %6, %9 : vector<16x128xf32>
    %cst_9 = arith.constant -3.8325069 : f32
    %cst_10 = arith.constant 3.8325069 : f32
    %11 = vector.broadcast %cst_9 : f32 to vector<16x128xf32>
    %12 = arith.maximumf %11, %10 : vector<16x128xf32>
    %13 = vector.broadcast %cst_10 : f32 to vector<16x128xf32>
    %14 = arith.minimumf %13, %12 : vector<16x128xf32>
    %15 = arith.mulf %14, %14 : vector<16x128xf32>
    %cst_11 = arith.constant 2.29050653E-4 : f32
    %16 = vector.broadcast %cst_11 : f32 to vector<16x128xf32>
    %17 = arith.mulf %16, %15 : vector<16x128xf32>
    %cst_12 = arith.constant 0.00340829091 : f32
    %18 = vector.broadcast %cst_12 : f32 to vector<16x128xf32>
    %19 = arith.addf %17, %18 : vector<16x128xf32>
    %20 = arith.mulf %19, %15 : vector<16x128xf32>
    %cst_13 = arith.constant 0.0509556942 : f32
    %21 = vector.broadcast %cst_13 : f32 to vector<16x128xf32>
    %22 = arith.addf %20, %21 : vector<16x128xf32>
    %23 = arith.mulf %22, %15 : vector<16x128xf32>
    %cst_14 = arith.constant 0.185208321 : f32
    %24 = vector.broadcast %cst_14 : f32 to vector<16x128xf32>
    %25 = arith.addf %23, %24 : vector<16x128xf32>
    %26 = arith.mulf %25, %15 : vector<16x128xf32>
    %cst_15 = arith.constant 1.12837911 : f32
    %27 = vector.broadcast %cst_15 : f32 to vector<16x128xf32>
    %28 = arith.addf %26, %27 : vector<16x128xf32>
    %29 = arith.mulf %14, %28 : vector<16x128xf32>
    %cst_16 = arith.constant -1.17916031E-7 : f32
    %30 = vector.broadcast %cst_16 : f32 to vector<16x128xf32>
    %31 = arith.mulf %30, %15 : vector<16x128xf32>
    %cst_17 = arith.constant 2.35479656E-5 : f32
    %32 = vector.broadcast %cst_17 : f32 to vector<16x128xf32>
    %33 = arith.addf %31, %32 : vector<16x128xf32>
    %34 = arith.mulf %33, %15 : vector<16x128xf32>
    %cst_18 = arith.constant 0.00101796258 : f32
    %35 = vector.broadcast %cst_18 : f32 to vector<16x128xf32>
    %36 = arith.addf %34, %35 : vector<16x128xf32>
    %37 = arith.mulf %36, %15 : vector<16x128xf32>
    %cst_19 = arith.constant 0.0140704699 : f32
    %38 = vector.broadcast %cst_19 : f32 to vector<16x128xf32>
    %39 = arith.addf %37, %38 : vector<16x128xf32>
    %40 = arith.mulf %39, %15 : vector<16x128xf32>
    %cst_20 = arith.constant 0.110985048 : f32
    %41 = vector.broadcast %cst_20 : f32 to vector<16x128xf32>
    %42 = arith.addf %40, %41 : vector<16x128xf32>
    %43 = arith.mulf %42, %15 : vector<16x128xf32>
    %cst_21 = arith.constant 0.497469246 : f32
    %44 = vector.broadcast %cst_21 : f32 to vector<16x128xf32>
    %45 = arith.addf %43, %44 : vector<16x128xf32>
    %46 = arith.mulf %45, %15 : vector<16x128xf32>
    %cst_22 = arith.constant 1.000000e+00 : f32
    %47 = vector.broadcast %cst_22 : f32 to vector<16x128xf32>
    %48 = arith.addf %46, %47 : vector<16x128xf32>
    %49 = tpu.reciprocal %48 : vector<16x128xf32> -> vector<16x128xf32>
    %50 = arith.mulf %29, %49 : vector<16x128xf32>
    %cst_23 = arith.constant 1.000000e+00 : f32
    %51 = vector.broadcast %cst_23 : f32 to vector<16x128xf32>
    %52 = arith.addf %51, %50 : vector<16x128xf32>
    %53 = arith.mulf %8, %52 : vector<16x128xf32>
    %c0_24 = arith.constant 0 : index
    %c0_25 = arith.constant 0 : index
    %54 = vector.load %arg4[%c0_24, %c0_25] : memref<128x128xf32, #tpu.memory_space<vmem>>, vector<128x128xf32>
    %cst_26 = arith.constant dense<0.000000e+00> : vector<16x128xf32>
    %55 = tpu.matmul %53, %54, %cst_26 {dimension_numbers = #tpu.dot_dimension_numbers<[1], [0], [0], [1], [0, 0, 1, 1], [], []>} : vector<16x128xf32>, vector<128x128xf32>, vector<16x128xf32> -> vector<16x128xf32>
    %56 = vector.broadcast %1 : vector<1x128xf32> to vector<16x128xf32>
    %57 = arith.addf %55, %56 : vector<16x128xf32>
    %cst_27 = arith.constant 5.000000e-01 : f32
    %58 = vector.broadcast %cst_27 : f32 to vector<16x128xf32>
    %59 = arith.mulf %58, %57 : vector<16x128xf32>
    %cst_28 = arith.constant 0.707106769 : f32
    %60 = vector.broadcast %cst_28 : f32 to vector<16x128xf32>
    %61 = arith.mulf %57, %60 : vector<16x128xf32>
    %cst_29 = arith.constant -3.8325069 : f32
    %cst_30 = arith.constant 3.8325069 : f32
    %62 = vector.broadcast %cst_29 : f32 to vector<16x128xf32>
    %63 = arith.maximumf %62, %61 : vector<16x128xf32>
    %64 = vector.broadcast %cst_30 : f32 to vector<16x128xf32>
    %65 = arith.minimumf %64, %63 : vector<16x128xf32>
    %66 = arith.mulf %65, %65 : vector<16x128xf32>
    %cst_31 = arith.constant 2.29050653E-4 : f32
    %67 = vector.broadcast %cst_31 : f32 to vector<16x128xf32>
    %68 = arith.mulf %67, %66 : vector<16x128xf32>
    %cst_32 = arith.constant 0.00340829091 : f32
    %69 = vector.broadcast %cst_32 : f32 to vector<16x128xf32>
    %70 = arith.addf %68, %69 : vector<16x128xf32>
    %71 = arith.mulf %70, %66 : vector<16x128xf32>
    %cst_33 = arith.constant 0.0509556942 : f32
    %72 = vector.broadcast %cst_33 : f32 to vector<16x128xf32>
    %73 = arith.addf %71, %72 : vector<16x128xf32>
    %74 = arith.mulf %73, %66 : vector<16x128xf32>
    %cst_34 = arith.constant 0.185208321 : f32
    %75 = vector.broadcast %cst_34 : f32 to vector<16x128xf32>
    %76 = arith.addf %74, %75 : vector<16x128xf32>
    %77 = arith.mulf %76, %66 : vector<16x128xf32>
    %cst_35 = arith.constant 1.12837911 : f32
    %78 = vector.broadcast %cst_35 : f32 to vector<16x128xf32>
    %79 = arith.addf %77, %78 : vector<16x128xf32>
    %80 = arith.mulf %65, %79 : vector<16x128xf32>
    %cst_36 = arith.constant -1.17916031E-7 : f32
    %81 = vector.broadcast %cst_36 : f32 to vector<16x128xf32>
    %82 = arith.mulf %81, %66 : vector<16x128xf32>
    %cst_37 = arith.constant 2.35479656E-5 : f32
    %83 = vector.broadcast %cst_37 : f32 to vector<16x128xf32>
    %84 = arith.addf %82, %83 : vector<16x128xf32>
    %85 = arith.mulf %84, %66 : vector<16x128xf32>
    %cst_38 = arith.constant 0.00101796258 : f32
    %86 = vector.broadcast %cst_38 : f32 to vector<16x128xf32>
    %87 = arith.addf %85, %86 : vector<16x128xf32>
    %88 = arith.mulf %87, %66 : vector<16x128xf32>
    %cst_39 = arith.constant 0.0140704699 : f32
    %89 = vector.broadcast %cst_39 : f32 to vector<16x128xf32>
    %90 = arith.addf %88, %89 : vector<16x128xf32>
    %91 = arith.mulf %90, %66 : vector<16x128xf32>
    %cst_40 = arith.constant 0.110985048 : f32
    %92 = vector.broadcast %cst_40 : f32 to vector<16x128xf32>
    %93 = arith.addf %91, %92 : vector<16x128xf32>
    %94 = arith.mulf %93, %66 : vector<16x128xf32>
    %cst_41 = arith.constant 0.497469246 : f32
    %95 = vector.broadcast %cst_41 : f32 to vector<16x128xf32>
    %96 = arith.addf %94, %95 : vector<16x128xf32>
    %97 = arith.mulf %96, %66 : vector<16x128xf32>
    %cst_42 = arith.constant 1.000000e+00 : f32
    %98 = vector.broadcast %cst_42 : f32 to vector<16x128xf32>
    %99 = arith.addf %97, %98 : vector<16x128xf32>
    %100 = tpu.reciprocal %99 : vector<16x128xf32> -> vector<16x128xf32>
    %101 = arith.mulf %80, %100 : vector<16x128xf32>
    %cst_43 = arith.constant 1.000000e+00 : f32
    %102 = vector.broadcast %cst_43 : f32 to vector<16x128xf32>
    %103 = arith.addf %102, %101 : vector<16x128xf32>
    %104 = arith.mulf %59, %103 : vector<16x128xf32>
    %c0_44 = arith.constant 0 : index
    %c0_45 = arith.constant 0 : index
    %105 = vector.load %arg6[%c0_44, %c0_45] : memref<16x128xf32, #tpu.memory_space<vmem>>, vector<16x128xf32>
    tpu.vector_store %arg6[%c0_44, %c0_45], %104 {strides = array<i32>} : memref<16x128xf32, #tpu.memory_space<vmem>>, vector<16x128xf32>,
    return
  }
  func.func @transform_0(%arg0: i32) -> (i32, i32) {
    %c0_i32 = arith.constant 0 : i32
    %c0_i32_0 = arith.constant 0 : i32
    return %arg0, %c0_i32 : i32, i32
  }
  func.func @transform_1(%arg0: i32) -> (i32, i32) {
    %c0_i32 = arith.constant 0 : i32
    %c0_i32_0 = arith.constant 0 : i32
    %c0_i32_1 = arith.constant 0 : i32
    return %c0_i32, %c0_i32_0 : i32, i32
  }
  func.func @transform_2(%arg0: i32) -> (i32, i32) {
    %c0_i32 = arith.constant 0 : i32
    %c0_i32_0 = arith.constant 0 : i32
    %c0_i32_1 = arith.constant 0 : i32
    return %c0_i32, %c0_i32_0 : i32, i32
  }
  func.func @transform_3(%arg0: i32) -> (i32, i32) {
    %c0_i32 = arith.constant 0 : i32
    %c0_i32_0 = arith.constant 0 : i32
    %c0_i32_1 = arith.constant 0 : i32
    return %c0_i32, %c0_i32_0 : i32, i32
  }
  func.func @transform_4(%arg0: i32) -> (i32, i32) {
    %c0_i32 = arith.constant 0 : i32
    %c0_i32_0 = arith.constant 0 : i32
    %c0_i32_1 = arith.constant 0 : i32
    return %c0_i32, %c0_i32_0 : i32, i32
  }
  func.func @transform_5(%arg0: i32) -> (i32, i32) {
    %c0_i32 = arith.constant 0 : i32
    %c0_i32_0 = arith.constant 0 : i32
    return %arg0, %c0_i32 : i32, i32
  }
}

module attributes {stable_mosaic.version = 11 : i64} {
  func.func @_mlp_kernel_resident(%arg0: i32, %arg1: memref<16x128xf32, #tpu.memory_space<vmem>>, %arg2: memref<128x128xf32, #tpu.memory_space<vmem>>, %arg3: memref<1x128xf32, #tpu.memory_space<vmem>>, %arg4: memref<128x128xf32, #tpu.memory_space<vmem>>, %arg5: memref<1x128xf32, #tpu.memory_space<vmem>>, %arg6: memref<16x128xf32, #tpu.memory_space<vmem>>) attributes {dimension_semantics = [#tpu.dimension_semantics<parallel>], iteration_bounds = array<i64: 1>, scalar_prefetch = 0 : i64, scratch_operands = 0 : i64, tpu.core_type = #tpu.core_type<tc>, window_params = [{transform_indices = @transform_0, window_bounds = array<i64: 16, 128>}, {pipeline_mode = #tpu.pipeline_mode<synchronous>, transform_indices = @transform_1, window_bounds = array<i64: 128, 128>}, {pipeline_mode = #tpu.pipeline_mode<synchronous>, transform_indices = @transform_2, window_bounds = array<i64: 1, 128>}, {pipeline_mode = #tpu.pipeline_mode<synchronous>, transform_indices = @transform_3, window_bounds = array<i64: 128, 128>}, {pipeline_mode = #tpu.pipeline_mode<synchronous>, transform_indices = @transform_4, window_bounds = array<i64: 1, 128>}, {transform_indices = @transform_5, window_bounds = array<i64: 16, 128>}]} {
    %c0 = arith.constant 0 : index
    %c0_0 = arith.constant 0 : index
    %0 = vector.load %arg3[%c0, %c0_0] : memref<1x128xf32, #tpu.memory_space<vmem>>, vector<1x128xf32>
    %c0_1 = arith.constant 0 : index
    %c0_2 = arith.constant 0 : index
    %1 = vector.load %arg5[%c0_1, %c0_2] : memref<1x128xf32, #tpu.memory_space<vmem>>, vector<1x128xf32>
    %c0_3 = arith.constant 0 : index
    %c0_4 = arith.constant 0 : index
    %2 = vector.load %arg1[%c0_3, %c0_4] : memref<16x128xf32, #tpu.memory_space<vmem>>, vector<16x128xf32>
    %c0_5 = arith.constant 0 : index
    %c0_6 = arith.constant 0 : index
    %3 = vector.load %arg2[%c0_5, %c0_6] : memref<128x128xf32, #tpu.memory_space<vmem>>, vector<128x128xf32>
    %cst = arith.constant dense<0.000000e+00> : vector<16x128xf32>
    %4 = tpu.matmul %2, %3, %cst {dimension_numbers = #tpu.dot_dimension_numbers<[1], [0], [0], [1], [0, 0, 1, 1], [], []>} : vector<16x128xf32>, vector<128x128xf32>, vector<16x128xf32> -> vector<16x128xf32>
    %5 = vector.broadcast %0 : vector<1x128xf32> to vector<16x128xf32>
    %6 = arith.addf %4, %5 : vector<16x128xf32>
    %cst_7 = arith.constant 5.000000e-01 : f32
    %7 = vector.broadcast %cst_7 : f32 to vector<16x128xf32>
    %8 = arith.mulf %7, %6 : vector<16x128xf32>
    %cst_8 = arith.constant 0.707106769 : f32
    %9 = vector.broadcast %cst_8 : f32 to vector<16x128xf32>
    %10 = arith.mulf %6, %9 : vector<16x128xf32>
    %cst_9 = arith.constant -3.8325069 : f32
    %cst_10 = arith.constant 3.8325069 : f32
    %11 = vector.broadcast %cst_9 : f32 to vector<16x128xf32>
    %12 = arith.maximumf %11, %10 : vector<16x128xf32>
    %13 = vector.broadcast %cst_10 : f32 to vector<16x128xf32>
    %14 = arith.minimumf %13, %12 : vector<16x128xf32>
    %15 = arith.mulf %14, %14 : vector<16x128xf32>
    %cst_11 = arith.constant 2.29050653E-4 : f32
    %16 = vector.broadcast %cst_11 : f32 to vector<16x128xf32>
    %17 = arith.mulf %16, %15 : vector<16x128xf32>
    %cst_12 = arith.constant 0.00340829091 : f32
    %18 = vector.broadcast %cst_12 : f32 to vector<16x128xf32>
    %19 = arith.addf %17, %18 : vector<16x128xf32>
    %20 = arith.mulf %19, %15 : vector<16x128xf32>
    %cst_13 = arith.constant 0.0509556942 : f32
    %21 = vector.broadcast %cst_13 : f32 to vector<16x128xf32>
    %22 = arith.addf %20, %21 : vector<16x128xf32>
    %23 = arith.mulf %22, %15 : vector<16x128xf32>
    %cst_14 = arith.constant 0.185208321 : f32
    %24 = vector.broadcast %cst_14 : f32 to vector<16x128xf32>
    %25 = arith.addf %23, %24 : vector<16x128xf32>
    %26 = arith.mulf %25, %15 : vector<16x128xf32>
    %cst_15 = arith.constant 1.12837911 : f32
    %27 = vector.broadcast %cst_15 : f32 to vector<16x128xf32>
    %28 = arith.addf %26, %27 : vector<16x128xf32>
    %29 = arith.mulf %14, %28 : vector<16x128xf32>
    %cst_16 = arith.constant -1.17916031E-7 : f32
    %30 = vector.broadcast %cst_16 : f32 to vector<16x128xf32>
    %31 = arith.mulf %30, %15 : vector<16x128xf32>
    %cst_17 = arith.constant 2.35479656E-5 : f32
    %32 = vector.broadcast %cst_17 : f32 to vector<16x128xf32>
    %33 = arith.addf %31, %32 : vector<16x128xf32>
    %34 = arith.mulf %33, %15 : vector<16x128xf32>
    %cst_18 = arith.constant 0.00101796258 : f32
    %35 = vector.broadcast %cst_18 : f32 to vector<16x128xf32>
    %36 = arith.addf %34, %35 : vector<16x128xf32>
    %37 = arith.mulf %36, %15 : vector<16x128xf32>
    %cst_19 = arith.constant 0.0140704699 : f32
    %38 = vector.broadcast %cst_19 : f32 to vector<16x128xf32>
    %39 = arith.addf %37, %38 : vector<16x128xf32>
    %40 = arith.mulf %39, %15 : vector<16x128xf32>
    %cst_20 = arith.constant 0.110985048 : f32
    %41 = vector.broadcast %cst_20 : f32 to vector<16x128xf32>
    %42 = arith.addf %40, %41 : vector<16x128xf32>
    %43 = arith.mulf %42, %15 : vector<16x128xf32>
    %cst_21 = arith.constant 0.497469246 : f32
    %44 = vector.broadcast %cst_21 : f32 to vector<16x128xf32>
    %45 = arith.addf %43, %44 : vector<16x128xf32>
    %46 = arith.mulf %45, %15 : vector<16x128xf32>
    %cst_22 = arith.constant 1.000000e+00 : f32
    %47 = vector.broadcast %cst_22 : f32 to vector<16x128xf32>
    %48 = arith.addf %46, %47 : vector<16x128xf32>
    %49 = tpu.reciprocal %48 : vector<16x128xf32> -> vector<16x128xf32>
    %50 = arith.mulf %29, %49 : vector<16x128xf32>
    %cst_23 = arith.constant 1.000000e+00 : f32
    %51 = vector.broadcast %cst_23 : f32 to vector<16x128xf32>
    %52 = arith.addf %51, %50 : vector<16x128xf32>
    %53 = arith.mulf %8, %52 : vector<16x128xf32>
    %c0_24 = arith.constant 0 : index
    %c0_25 = arith.constant 0 : index
    %54 = vector.load %arg4[%c0_24, %c0_25] : memref<128x128xf32, #tpu.memory_space<vmem>>, vector<128x128xf32>
    %cst_26 = arith.constant dense<0.000000e+00> : vector<16x128xf32>
    %55 = tpu.matmul %53, %54, %cst_26 {dimension_numbers = #tpu.dot_dimension_numbers<[1], [0], [0], [1], [0, 0, 1, 1], [], []>} : vector<16x128xf32>, vector<128x128xf32>, vector<16x128xf32> -> vector<16x128xf32>
    %56 = vector.broadcast %1 : vector<1x128xf32> to vector<16x128xf32>
    %57 = arith.addf %55, %56 : vector<16x128xf32>
    %cst_27 = arith.constant 5.000000e-01 : f32
    %58 = vector.broadcast %cst_27 : f32 to vector<16x128xf32>
    %59 = arith.mulf %58, %57 : vector<16x128xf32>
    %cst_28 = arith.constant 0.707106769 : f32
    %60 = vector.broadcast %cst_28 : f32 to vector<16x128xf32>
    %61 = arith.mulf %57, %60 : vector<16x128xf32>
    %cst_29 = arith.constant -3.8325069 : f32
    %cst_30 = arith.constant 3.8325069 : f32
    %62 = vector.broadcast %cst_29 : f32 to vector<16x128xf32>
    %63 = arith.maximumf %62, %61 : vector<16x128xf32>
    %64 = vector.broadcast %cst_30 : f32 to vector<16x128xf32>
    %65 = arith.minimumf %64, %63 : vector<16x128xf32>
    %66 = arith.mulf %65, %65 : vector<16x128xf32>
    %cst_31 = arith.constant 2.29050653E-4 : f32
    %67 = vector.broadcast %cst_31 : f32 to vector<16x128xf32>
    %68 = arith.mulf %67, %66 : vector<16x128xf32>
    %cst_32 = arith.constant 0.00340829091 : f32
    %69 = vector.broadcast %cst_32 : f32 to vector<16x128xf32>
    %70 = arith.addf %68, %69 : vector<16x128xf32>
    %71 = arith.mulf %70, %66 : vector<16x128xf32>
    %cst_33 = arith.constant 0.0509556942 : f32
    %72 = vector.broadcast %cst_33 : f32 to vector<16x128xf32>
    %73 = arith.addf %71, %72 : vector<16x128xf32>
    %74 = arith.mulf %73, %66 : vector<16x128xf32>
    %cst_34 = arith.constant 0.185208321 : f32
    %75 = vector.broadcast %cst_34 : f32 to vector<16x128xf32>
    %76 = arith.addf %74, %75 : vector<16x128xf32>
    %77 = arith.mulf %76, %66 : vector<16x128xf32>
    %cst_35 = arith.constant 1.12837911 : f32
    %78 = vector.broadcast %cst_35 : f32 to vector<16x128xf32>
    %79 = arith.addf %77, %78 : vector<16x128xf32>
    %80 = arith.mulf %65, %79 : vector<16x128xf32>
    %cst_36 = arith.constant -1.17916031E-7 : f32
    %81 = vector.broadcast %cst_36 : f32 to vector<16x128xf32>
    %82 = arith.mulf %81, %66 : vector<16x128xf32>
    %cst_37 = arith.constant 2.35479656E-5 : f32
    %83 = vector.broadcast %cst_37 : f32 to vector<16x128xf32>
    %84 = arith.addf %82, %83 : vector<16x128xf32>
    %85 = arith.mulf %84, %66 : vector<16x128xf32>
    %cst_38 = arith.constant 0.00101796258 : f32
    %86 = vector.broadcast %cst_38 : f32 to vector<16x128xf32>
    %87 = arith.addf %85, %86 : vector<16x128xf32>
    %88 = arith.mulf %87, %66 : vector<16x128xf32>
    %cst_39 = arith.constant 0.0140704699 : f32
    %89 = vector.broadcast %cst_39 : f32 to vector<16x128xf32>
    %90 = arith.addf %88, %89 : vector<16x128xf32>
    %91 = arith.mulf %90, %66 : vector<16x128xf32>
    %cst_40 = arith.constant 0.110985048 : f32
    %92 = vector.broadcast %cst_40 : f32 to vector<16x128xf32>
    %93 = arith.addf %91, %92 : vector<16x128xf32>
    %94 = arith.mulf %93, %66 : vector<16x128xf32>
    %cst_41 = arith.constant 0.497469246 : f32
    %95 = vector.broadcast %cst_41 : f32 to vector<16x128xf32>
    %96 = arith.addf %94, %95 : vector<16x128xf32>
    %97 = arith.mulf %96, %66 : vector<16x128xf32>
    %cst_42 = arith.constant 1.000000e+00 : f32
    %98 = vector.broadcast %cst_42 : f32 to vector<16x128xf32>
    %99 = arith.addf %97, %98 : vector<16x128xf32>
    %100 = tpu.reciprocal %99 : vector<16x128xf32> -> vector<16x128xf32>
    %101 = arith.mulf %80, %100 : vector<16x128xf32>
    %cst_43 = arith.constant 1.000000e+00 : f32
    %102 = vector.broadcast %cst_43 : f32 to vector<16x128xf32>
    %103 = arith.addf %102, %101 : vector<16x128xf32>
    %104 = arith.mulf %59, %103 : vector<16x128xf32>
    %c0_44 = arith.constant 0 : index
    %c0_45 = arith.constant 0 : index
    %105 = vector.load %arg6[%c0_44, %c0_45] : memref<16x128xf32, #tpu.memory_space<vmem>>, vector<16x128xf32>
    tpu.vector_store %arg6[%c0_44, %c0_45], %104 {strides = array<i32>} : memref<16x128xf32, #tpu.memory_space<vmem>>, vector<16x128xf32>,
    return
  }
  func.func @transform_0(%arg0: i32) -> (i32, i32) {
    %c0_i32 = arith.constant 0 : i32
    %c0_i32_0 = arith.constant 0 : i32
    return %arg0, %c0_i32 : i32, i32
  }
  func.func @transform_1(%arg0: i32) -> (i32, i32) {
    %c0_i32 = arith.constant 0 : i32
    %c0_i32_0 = arith.constant 0 : i32
    %c0_i32_1 = arith.constant 0 : i32
    return %c0_i32, %c0_i32_0 : i32, i32
  }
  func.func @transform_2(%arg0: i32) -> (i32, i32) {
    %c0_i32 = arith.constant 0 : i32
    %c0_i32_0 = arith.constant 0 : i32
    %c0_i32_1 = arith.constant 0 : i32
    return %c0_i32, %c0_i32_0 : i32, i32
  }
  func.func @transform_3(%arg0: i32) -> (i32, i32) {
    %c0_i32 = arith.constant 0 : i32
    %c0_i32_0 = arith.constant 0 : i32
    %c0_i32_1 = arith.constant 0 : i32
    return %c0_i32, %c0_i32_0 : i32, i32
  }
  func.func @transform_4(%arg0: i32) -> (i32, i32) {
    %c0_i32 = arith.constant 0 : i32
    %c0_i32_0 = arith.constant 0 : i32
    %c0_i32_1 = arith.constant 0 : i32
    return %c0_i32, %c0_i32_0 : i32, i32
  }
  func.func @transform_5(%arg0: i32) -> (i32, i32) {
    %c0_i32 = arith.constant 0 : i32
    %c0_i32_0 = arith.constant 0 : i32
    return %arg0, %c0_i32 : i32, i32
  }
}

</mosaic_0001>

<bundles_post_ra>
// kernel: _mlp_pallas.1
= control target key start
LH: loop header
LB: loop body
LE: loop exit
PB: predicated region body
PF: predicated region fallthrough
CT: control target
= control target key end

     0   :  { %10 = vsyncpa [#allocation3], 0  ;;  %s793_s0 = inlined_call_operand.hbm [shape: f32[16,128], index: 0, kind: input, shape index: {}]   ;;  %s794_s1 = inlined_call_operand.hbm [shape: f32[128,128], index: 1, kind: input, shape index: {}]   ;;  %s795_s2 = inlined_call_operand.vmem [shape: f32[1,128], index: 2, kind: input, shape index: {}]   ;;  %s796_s3 = inlined_call_operand.hbm [shape: f32[128,128], index: 3, kind: input, shape index: {}]   ;;  %s797_s4 = inlined_call_operand.vmem [shape: f32[1,128], index: 4, kind: input, shape index: {}]   ;;  %s798_s5 = inlined_call_operand.hbm [shape: f32[16,128], index: 5, kind: output, shape index: {}]  }
   0x1   :  { %11 = vsyncpa [#allocation6], 0 }
   0x2   :  { %12 = vsyncpa [#allocation4], 0  ;;  %s684_s18 = smov [#allocation5]   ;;  %s685_s20 = smov [#allocation2]  }
   0x3   :  { %s30_s19 = sshll.u32 %s684_s18, 4  ;;  %s18_s21 = sshll.u32 %s685_s20, 4  ;;  %s31_s19 = int_to_ptr.vmem [resolvable:$true] %s30_s19  ;;  %s720_s21 = int_to_ptr.vmem [resolvable:$true] %s18_s21 }
   0x4   :  { %s590_s24 = scalar_lea.hbm %s794_s1, 2048 }
   0x5   :  { %p591_p0 = scmp.ne.s32.totalorder %s794_s1, %s590_s24  ;;  %p594_p1 = scmp.lt.u32.totalorder %s590_s24, %s794_s1 }
   0x7   :  { %p596_p2 = pnand %p594_p1, %p591_p0 }
   0x9   :  { %599 = shalt.err (!%p596_p2)
}
   0xa   :  { %s600_s29 = scalar_lea.vmem %s31_s19, 2048  ;;  %p605_p4 = scmp.lt.s32.totalorder %s31_s19, %s31_s19 }
   0xb   :  { %p601_p3 = scmp.ne.s32.totalorder %s31_s19, %s600_s29  ;;  %p606_p5 = scmp.lt.s32.totalorder %s600_s29, %s600_s29 }
   0xd   :  { %p607_p6 = por %p606_p5, %p605_p4 }
   0xf   :  { %p608_p7 = pnand %p607_p6, %p601_p3 }
  0x11   :  { %611 = shalt.err (!%p608_p7)
}
  0x12   :  { %s686_s30 = smov 128   ;;  %s687_s6 = smov 8  }
  0x13   :  { %36 = dma.hbm_to_vmem [thread:$0]  %s794_s1, 2048, %s31_s19, [#allocation6], %s686_s30, %s686_s30, %s687_s6  }
  0x14   :  { %s612_s11 = scalar_lea.hbm %s793_s0, 256 }
  0x15   :  { %p613_p8 = scmp.ne.s32.totalorder %s793_s0, %s612_s11  ;;  %p616_p9 = scmp.lt.u32.totalorder %s612_s11, %s793_s0 }
  0x17   :  { %p618_p10 = pnand %p616_p9, %p613_p8 }
  0x19   :  { %621 = shalt.err (!%p618_p10)
}
  0x1a   :  { %s622_s16 = scalar_lea.vmem %s720_s21, 256  ;;  %p627_p12 = scmp.lt.s32.totalorder %s720_s21, %s720_s21 }
  0x1b   :  { %p623_p11 = scmp.ne.s32.totalorder %s720_s21, %s622_s16  ;;  %p628_p13 = scmp.lt.s32.totalorder %s622_s16, %s622_s16 }
  0x1d   :  { %p629_p0 = por %p628_p13, %p627_p12 }
  0x1f   :  { %p630_p1 = pnand %p629_p0, %p623_p11 }
  0x21   :  { %633 = shalt.err (!%p630_p1)
}
  0x22   :  { %24 = dma.hbm_to_vmem [thread:$0]  %s793_s0, 256, %s720_s21, [#allocation3], %s686_s30, %s686_s30, %s687_s6  }
  0x23   :  { %s688_s18 = smov [#allocation7]   ;;  %s634_s23 = scalar_lea.hbm %s796_s3, 2048 }
  0x24   :  { %s44_s19 = sshll.u32 %s688_s18, 4  ;;  %p635_p2 = scmp.ne.s32.totalorder %s796_s3, %s634_s23  ;;  %s45_s19 = int_to_ptr.vmem [resolvable:$true] %s44_s19 }
  0x25   :  { %p638_p3 = scmp.lt.u32.totalorder %s634_s23, %s796_s3 }
  0x27   :  { %p640_p4 = pnand %p638_p3, %p635_p2 }
  0x29   :  { %643 = shalt.err (!%p640_p4)
}
  0x2a   :  { %s644_s28 = scalar_lea.vmem %s45_s19, 2048  ;;  %p649_p6 = scmp.lt.s32.totalorder %s45_s19, %s45_s19 }
  0x2b   :  { %p645_p5 = scmp.ne.s32.totalorder %s45_s19, %s644_s28  ;;  %p650_p7 = scmp.lt.s32.totalorder %s644_s28, %s644_s28 }
  0x2d   :  { %p651_p8 = por %p650_p7, %p649_p6 }
  0x2f   :  { %p652_p9 = pnand %p651_p8, %p645_p5 }
  0x31   :  { %655 = shalt.err (!%p652_p9)
}
  0x32   :  { %50 = dma.hbm_to_vmem [thread:$0]  %s796_s3, 2048, %s45_s19, [#allocation6], %s686_s30, %s686_s30, %s687_s6  }
  0x33   :  { %678 = dma.done.wait [#allocation3], 256  }
  0x34   :  { %679 = vsyncadd [#allocation3], 4294967040 }
  0x35   :  { %680 = dma.done.wait [#allocation6], 4096  }
  0x36   :  { %681 = vsyncadd [#allocation6], 4294963200  ;;  %v66_v0 = vld [vmem:[#allocation5] sm:$0xff]  ;;  %v67_v1 = vld [vmem:[#allocation5 + $0x8] sm:$0xff] }
  0x37   :  { %v68_v2 = vld [vmem:[#allocation5 + $0x10] sm:$0xff]  ;;  %v512_v3 = vpack.c.bf16 %v67_v1, %v66_v0  ;;  %v69_v4 = vld [vmem:[#allocation5 + $0x18] sm:$0xff]  ;;  %v70_v6 = vld [vmem:[#allocation5 + $0x20] sm:$0xff] }
  0x38   :  { %v516_v5 = vpack.c.bf16 %v69_v4, %v68_v2  ;;  %v71_v7 = vld [vmem:[#allocation5 + $0x28] sm:$0xff]  ;;  %v64_v9 = vld [vmem:[#allocation2] sm:$0xff]  ;;  %v73_v11 = vld [vmem:[#allocation5 + $0x38] sm:$0xff] }
  0x39   :  { %513 = vmatprep.subr.bf16.mxu0 %v512_v3  ;;  %v520_v8 = vpack.c.bf16 %v71_v7, %v70_v6  ;;  %v72_v10 = vld [vmem:[#allocation5 + $0x30] sm:$0xff]  ;;  %474 = vmatprep.mubr.f32.mxu0 %v64_v9  ;;  %v74_v13 = vld [vmem:[#allocation5 + $0x40] sm:$0xff]  ;;  %v75_v14 = vld [vmem:[#allocation5 + $0x48] sm:$0xff] }
  0x3a   :  { %515 = vmatpush3.bf16.msra.mxu0 %v512_v3  ;;  %v524_v12 = vpack.c.bf16 %v73_v11, %v72_v10  ;;  %v528_v15 = vpack.c.bf16 %v75_v14, %v74_v13  ;;  %v76_v16 = vld [vmem:[#allocation5 + $0x50] sm:$0xff]  ;;  %v77_v17 = vld [vmem:[#allocation5 + $0x58] sm:$0xff]  ;;  %v78_v19 = vld [vmem:[#allocation5 + $0x60] sm:$0xff] }
  0x3b   :  { %517 = vmatprep.subr.bf16.mxu0 %v516_v5  ;;  %v532_v18 = vpack.c.bf16 %v77_v17, %v76_v16  ;;  %v79_v20 = vld [vmem:[#allocation5 + $0x68] sm:$0xff]  ;;  %v80_v22 = vld [vmem:[#allocation5 + $0x70] sm:$0xff]  ;;  %v81_v23 = vld [vmem:[#allocation5 + $0x78] sm:$0xff] }
  0x3c   :  { %v536_v21 = vpack.c.bf16 %v79_v20, %v78_v19  ;;  %v540_v24 = vpack.c.bf16 %v81_v23, %v80_v22  ;;  %v65_v25 = vld [vmem:[#allocation2 + $0x8] sm:$0xff]  ;;  %v223_v26 = vld [vmem:[#allocation7] sm:$0xff]  ;;  %v224_v27 = vld [vmem:[#allocation7 + $0x8] sm:$0xff] }
  0x3d   :  { %v544_v28 = vpack.c.bf16 %v224_v27, %v223_v26  ;;  %v225_v29 = vld [vmem:[#allocation7 + $0x10] sm:$0xff]  ;;  %v226_v30 = vld [vmem:[#allocation7 + $0x18] sm:$0xff]  ;;  %v227_v32 = vld [vmem:[#allocation7 + $0x20] sm:$0xff] }
  0x3e   :  { %519 = vmatpush3.bf16.msra.mxu0 %v516_v5  ;;  %v548_v31 = vpack.c.bf16 %v226_v30, %v225_v29  ;;  %v228_v33 = vld [vmem:[#allocation7 + $0x28] sm:$0xff]  ;;  %v229_v34 = vld [vmem:[#allocation7 + $0x30] sm:$0xff]  ;;  %v230_v36 = vld [vmem:[#allocation7 + $0x38] sm:$0xff] }
  0x3f   :  { %521 = vmatprep.subr.bf16.mxu0 %v520_v8  ;;  %545 = vmatprep.subr.bf16.mxu1 %v544_v28  ;;  %v552_v35 = vpack.c.bf16 %v228_v33, %v227_v32  ;;  %v556_v37 = vpack.c.bf16 %v230_v36, %v229_v34  ;;  %v231_v38 = vld [vmem:[#allocation7 + $0x40] sm:$0xff]  ;;  %v232_v39 = vld [vmem:[#allocation7 + $0x48] sm:$0xff]  ;;  %v233_v41 = vld [vmem:[#allocation7 + $0x50] sm:$0xff] }
  0x40   :  { %547 = vmatpush3.bf16.msra.mxu1 %v544_v28  ;;  %v560_v40 = vpack.c.bf16 %v232_v39, %v231_v38  ;;  %v234_v42 = vld [vmem:[#allocation7 + $0x58] sm:$0xff]  ;;  %v235_v44 = vld [vmem:[#allocation7 + $0x60] sm:$0xff]  ;;  %v236_v45 = vld [vmem:[#allocation7 + $0x68] sm:$0xff] }
  0x41   :  { %549 = vmatprep.subr.bf16.mxu1 %v548_v31  ;;  %v564_v43 = vpack.c.bf16 %v234_v42, %v233_v41  ;;  %v568_v46 = vpack.c.bf16 %v236_v45, %v235_v44  ;;  %v237_v47 = vld [vmem:[#allocation7 + $0x70] sm:$0xff]  ;;  %v238_v48 = vld [vmem:[#allocation7 + $0x78] sm:$0xff] }
  0x42   :  { %523 = vmatpush3.bf16.msra.mxu0 %v520_v8  ;;  %v572_v49 = vpack.c.bf16 %v238_v48, %v237_v47  ;;  %v400_v50 = vld [vmem:[%s795_s2] ss:$0 sm:$0xff] }
  0x43   :  { %525 = vmatprep.subr.bf16.mxu0 %v524_v12 }
  0x44   :  { %551 = vmatpush3.bf16.msra.mxu1 %v548_v31 }
  0x45   :  { %553 = vmatprep.subr.bf16.mxu1 %v552_v35 }
  0x46   :  { %527 = vmatpush3.bf16.msra.mxu0 %v524_v12 }
  0x47   :  { %529 = vmatprep.subr.bf16.mxu0 %v528_v15 }
  0x48   :  { %555 = vmatpush3.bf16.msra.mxu1 %v552_v35 }
  0x49   :  { %557 = vmatprep.subr.bf16.mxu1 %v556_v37 }
  0x4a   :  { %531 = vmatpush3.bf16.msra.mxu0 %v528_v15 }
  0x4b   :  { %533 = vmatprep.subr.bf16.mxu0 %v532_v18 }
  0x4c   :  { %559 = vmatpush3.bf16.msra.mxu1 %v556_v37 }
  0x4d   :  { %561 = vmatprep.subr.bf16.mxu1 %v560_v40 }
  0x4e   :  { %535 = vmatpush3.bf16.msra.mxu0 %v532_v18 }
  0x4f   :  { %537 = vmatprep.subr.bf16.mxu0 %v536_v21 }
  0x50   :  { %563 = vmatpush3.bf16.msra.mxu1 %v560_v40 }
  0x51   :  { %565 = vmatprep.subr.bf16.mxu1 %v564_v43 }
  0x52   :  { %539 = vmatpush3.bf16.msra.mxu0 %v536_v21 }
  0x53   :  { %541 = vmatprep.subr.bf16.mxu0 %v540_v24 }
  0x54   :  { %567 = vmatpush3.bf16.msra.mxu1 %v564_v43 }
  0x55   :  { %569 = vmatprep.subr.bf16.mxu1 %v568_v46 }
  0x56   :  { %543 = vmatpush3.bf16.msra.mxu0 %v540_v24 }
  0x58   :  { %571 = vmatpush3.bf16.msra.mxu1 %v568_v46 }
  0x59   :  { %475 = vmatmul.mubr.f32.vlgmr.msra.gmra.mrb[0].mxu0 %v65_v25  ;;  %573 = vmatprep.subr.bf16.mxu1 %v572_v49 }
  0x5c   :  { %575 = vmatpush3.bf16.msra.mxu1 %v572_v49  ;;  %v403_v49 = vld [vmem:[%s797_s4] ss:$0 sm:$0xff]  ;;  %s689_s4 = smov [#allocation8]  }
  0x5d   :  { %s387_s8 = sshll.u32 %s689_s4, 4  ;;  %s388_s8 = int_to_ptr.vmem [resolvable:$true] %s387_s8 }
  0x5e   :  { %s656_s9 = scalar_lea.vmem %s388_s8, 256  ;;  %p661_p11 = scmp.lt.s32.totalorder %s388_s8, %s388_s8 }
  0x5f   :  { %p657_p10 = scmp.ne.s32.totalorder %s388_s8, %s656_s9  ;;  %p662_p12 = scmp.lt.s32.totalorder %s656_s9, %s656_s9 }
  0x61   :  { %p663_p13 = por %p662_p12, %p661_p11 }
  0x63   :  { %p664_p0 = pnand %p663_p13, %p657_p10 }
 0x12c   :  { %v476_v51 = vpop.f32.mrb[0].mxu0 }
 0x12d   :  { %v160_v52 = vadd.f32 %v476_v51, %v400_v50  ;;  %v154_v53 = vpop.f32.mrb[1].mxu0 }
 0x12e   :  { %v155_v54 = vadd.f32 %v400_v50, %v154_v53 }
 0x12f   :  { %v166_v55 = vmul.f32 0.70710677, %v160_v52  ;;  %v164_v46 = vmul.f32 0.5, %v160_v52 }
 0x130   :  { %v165_v56 = vmul.f32 0.70710677, %v155_v54  ;;  %v163_v44 = vmul.f32 0.5, %v155_v54 }
 0x131   :  { %v402_v57 = vclamps-f32 %v166_v55, 3.832507 }
 0x132   :  { %v401_v58 = vclamps-f32 %v165_v56, 3.832507 }
 0x133   :  { %v172_v59 = vmul.f32 %v402_v57, %v402_v57 }
 0x134   :  { %v171_v60 = vmul.f32 %v401_v58, %v401_v58 }
 0x135   :  { %v192_v61 = vmul.f32 -1.1791603e-07, %v172_v59  ;;  %v174_v62 = vmul.f32 0.00022905065, %v172_v59 }
 0x136   :  { %v191_v63 = vmul.f32 -1.1791603e-07, %v171_v60  ;;  %v173_v0 = vmul.f32 0.00022905065, %v171_v60 }
 0x137   :  { %v194_v1 = vadd.f32 2.3547966e-05, %v192_v61  ;;  %v176_v4 = vadd.f32 0.003408291, %v174_v62 }
 0x138   :  { %v193_v2 = vadd.f32 2.3547966e-05, %v191_v63  ;;  %v175_v6 = vadd.f32 0.003408291, %v173_v0 }
 0x139   :  { %v196_v3 = vmul.f32 %v194_v1, %v172_v59  ;;  %v178_v10 = vmul.f32 %v176_v4, %v172_v59 }
 0x13a   :  { %v195_v5 = vmul.f32 %v193_v2, %v171_v60  ;;  %v177_v12 = vmul.f32 %v175_v6, %v171_v60 }
 0x13b   :  { %v198_v7 = vadd.f32 0.0010179626, %v196_v3  ;;  %v180_v16 = vadd.f32 0.050955694, %v178_v10 }
 0x13c   :  { %v197_v8 = vadd.f32 0.0010179626, %v195_v5  ;;  %v179_v18 = vadd.f32 0.050955694, %v177_v12 }
 0x13d   :  { %v200_v9 = vmul.f32 %v198_v7, %v172_v59  ;;  %v182_v22 = vmul.f32 %v180_v16, %v172_v59 }
 0x13e   :  { %v199_v11 = vmul.f32 %v197_v8, %v171_v60  ;;  %v181_v24 = vmul.f32 %v179_v18, %v171_v60 }
 0x13f   :  { %v202_v13 = vadd.f32 0.01407047, %v200_v9  ;;  %v184_v28 = vadd.f32 0.18520832, %v182_v22 }
 0x140   :  { %v201_v14 = vadd.f32 0.01407047, %v199_v11  ;;  %v183_v30 = vadd.f32 0.18520832, %v181_v24 }
 0x141   :  { %v204_v15 = vmul.f32 %v202_v13, %v172_v59  ;;  %v186_v33 = vmul.f32 %v184_v28, %v172_v59 }
 0x142   :  { %v203_v17 = vmul.f32 %v201_v14, %v171_v60  ;;  %v185_v34 = vmul.f32 %v183_v30, %v171_v60 }
 0x143   :  { %v206_v19 = vadd.f32 0.11098505, %v204_v15  ;;  %v188_v35 = vadd.f32 1.1283791, %v186_v33 }
 0x144   :  { %v205_v20 = vadd.f32 0.11098505, %v203_v17  ;;  %v187_v36 = vadd.f32 1.1283791, %v185_v34 }
 0x145   :  { %v208_v21 = vmul.f32 %v206_v19, %v172_v59  ;;  %v190_v37 = vmul.f32 %v402_v57, %v188_v35 }
 0x146   :  { %v207_v23 = vmul.f32 %v205_v20, %v171_v60  ;;  %v189_v39 = vmul.f32 %v401_v58, %v187_v36 }
 0x147   :  { %v210_v25 = vadd.f32 0.49746925, %v208_v21 }
 0x148   :  { %v209_v26 = vadd.f32 0.49746925, %v207_v23 }
 0x149   :  { %v212_v27 = vmul.f32 %v210_v25, %v172_v59 }
 0x14a   :  { %v211_v29 = vmul.f32 %v209_v26, %v171_v60 }
 0x14b   :  { %v214_v31 = vadd.f32 1.0, %v212_v27 }
 0x14c   :  { %v213_v32 = vadd.f32 1.0, %v211_v29 }
 0x14d   :  { %582 = vrcp.f32 %v214_v31 }
 0x14e   :  { %584 = vrcp.f32 %v213_v32 }
 0x157   :  { %v583_v38 = vpop.eup %582 }
 0x158   :  { %v585_v40 = vpop.eup %584  ;;  %v218_v41 = vmul.f32 %v583_v38, %v190_v37 }
 0x159   :  { %v217_v42 = vmul.f32 %v585_v40, %v189_v39 }
 0x15a   :  { %v220_v43 = vadd.f32 1.0, %v218_v41 }
 0x15b   :  { %v219_v45 = vadd.f32 1.0, %v217_v42 }
 0x15c   :  { %v222_v48 = vmul.f32 %v220_v43, %v164_v46 }
 0x15d   :  { %v221_v47 = vmul.f32 %v219_v45, %v163_v44 }
 0x15f   :  { %509 = vmatprep.mubr.f32.mxu1 %v221_v47 }
 0x160   :  { %510 = vmatmul.mubr.f32.vlgmr.msra.gmra.mrb[0].mxu1 %v222_v48 }
 0x233   :  { %v511_v50 = vpop.f32.mrb[0].mxu1 }
 0x234   :  { %v317_v51 = vadd.f32 %v511_v50, %v403_v49  ;;  %v311_v53 = vpop.f32.mrb[1].mxu1 }
 0x235   :  { %v312_v55 = vadd.f32 %v403_v49, %v311_v53 }
 0x236   :  { %v323_v56 = vmul.f32 0.70710677, %v317_v51  ;;  %v321_v42 = vmul.f32 0.5, %v317_v51 }
 0x237   :  { %v322_v57 = vmul.f32 0.70710677, %v312_v55  ;;  %v320_v44 = vmul.f32 0.5, %v312_v55 }
 0x238   :  { %v405_v58 = vclamps-f32 %v323_v56, 3.832507 }
 0x239   :  { %v404_v59 = vclamps-f32 %v322_v57, 3.832507 }
 0x23a   :  { %v329_v60 = vmul.f32 %v405_v58, %v405_v58 }
 0x23b   :  { %v328_v54 = vmul.f32 %v404_v59, %v404_v59 }
 0x23c   :  { %v349_v61 = vmul.f32 -1.1791603e-07, %v329_v60  ;;  %v331_v52 = vmul.f32 0.00022905065, %v329_v60 }
 0x23d   :  { %v348_v62 = vmul.f32 -1.1791603e-07, %v328_v54  ;;  %v330_v0 = vmul.f32 0.00022905065, %v328_v54 }
 0x23e   :  { %v351_v63 = vadd.f32 2.3547966e-05, %v349_v61  ;;  %v333_v3 = vadd.f32 0.003408291, %v331_v52 }
 0x23f   :  { %v350_v1 = vadd.f32 2.3547966e-05, %v348_v62  ;;  %v332_v6 = vadd.f32 0.003408291, %v330_v0 }
 0x240   :  { %v353_v2 = vmul.f32 %v351_v63, %v329_v60  ;;  %v335_v9 = vmul.f32 %v333_v3, %v329_v60 }
 0x241   :  { %v352_v4 = vmul.f32 %v350_v1, %v328_v54  ;;  %v334_v12 = vmul.f32 %v332_v6, %v328_v54 }
 0x242   :  { %v355_v5 = vadd.f32 0.0010179626, %v353_v2  ;;  %v337_v15 = vadd.f32 0.050955694, %v335_v9 }
 0x243   :  { %v354_v7 = vadd.f32 0.0010179626, %v352_v4  ;;  %v336_v18 = vadd.f32 0.050955694, %v334_v12 }
 0x244   :  { %v357_v8 = vmul.f32 %v355_v5, %v329_v60  ;;  %v339_v21 = vmul.f32 %v337_v15, %v329_v60 }
 0x245   :  { %v356_v10 = vmul.f32 %v354_v7, %v328_v54  ;;  %v338_v24 = vmul.f32 %v336_v18, %v328_v54 }
 0x246   :  { %v359_v11 = vadd.f32 0.01407047, %v357_v8  ;;  %v341_v27 = vadd.f32 0.18520832, %v339_v21 }
 0x247   :  { %v358_v13 = vadd.f32 0.01407047, %v356_v10  ;;  %v340_v30 = vadd.f32 0.18520832, %v338_v24 }
 0x248   :  { %v361_v14 = vmul.f32 %v359_v11, %v329_v60  ;;  %v343_v32 = vmul.f32 %v341_v27, %v329_v60 }
 0x249   :  { %v360_v16 = vmul.f32 %v358_v13, %v328_v54  ;;  %v342_v33 = vmul.f32 %v340_v30, %v328_v54 }
 0x24a   :  { %v363_v17 = vadd.f32 0.11098505, %v361_v14  ;;  %v345_v34 = vadd.f32 1.1283791, %v343_v32 }
 0x24b   :  { %v362_v19 = vadd.f32 0.11098505, %v360_v16  ;;  %v344_v35 = vadd.f32 1.1283791, %v342_v33 }
 0x24c   :  { %v365_v20 = vmul.f32 %v363_v17, %v329_v60  ;;  %v347_v36 = vmul.f32 %v405_v58, %v345_v34 }
 0x24d   :  { %v364_v22 = vmul.f32 %v362_v19, %v328_v54  ;;  %v346_v38 = vmul.f32 %v404_v59, %v344_v35 }
 0x24e   :  { %v367_v23 = vadd.f32 0.49746925, %v365_v20 }
 0x24f   :  { %v366_v25 = vadd.f32 0.49746925, %v364_v22 }
 0x250   :  { %v369_v26 = vmul.f32 %v367_v23, %v329_v60 }
 0x251   :  { %v368_v28 = vmul.f32 %v366_v25, %v328_v54 }
 0x252   :  { %v371_v29 = vadd.f32 1.0, %v369_v26 }
 0x253   :  { %v370_v31 = vadd.f32 1.0, %v368_v28 }
 0x254   :  { %586 = vrcp.f32 %v371_v29 }
 0x255   :  { %588 = vrcp.f32 %v370_v31 }
 0x25e   :  { %v587_v37 = vpop.eup %586 }
 0x25f   :  { %v589_v39 = vpop.eup %588  ;;  %v375_v40 = vmul.f32 %v587_v37, %v347_v36 }
 0x260   :  { %v374_v41 = vmul.f32 %v589_v39, %v346_v38 }
 0x261   :  { %v377_v43 = vadd.f32 1.0, %v375_v40 }
 0x262   :  { %v376_v45 = vadd.f32 1.0, %v374_v41 }
 0x263   :  { %v379_v46 = vmul.f32 %v377_v43, %v321_v42 }
 0x264   :  { %v378_v47 = vmul.f32 %v376_v45, %v320_v44 }
 0x265   :  { %381 = vst [vmem:[#allocation8 + $0x8] sm:$0xff] %v379_v46 }
 0x266   :  { %380 = vst [vmem:[#allocation8] sm:$0xff] %v378_v47 }
 0x267   :  { %667 = shalt.err (!%p664_p0)
}
 0x268   :  { %s668_s12 = scalar_lea.hbm %s798_s5, 256 }
 0x269   :  { %p669_p1 = scmp.ne.s32.totalorder %s798_s5, %s668_s12  ;;  %p672_p2 = scmp.lt.u32.totalorder %s668_s12, %s798_s5 }
 0x26b   :  { %p674_p3 = pnand %p672_p2, %p669_p1 }
 0x26d   :  { %677 = shalt.err (!%p674_p3)
}
 0x26e   :  { %393 = dma.vmem_to_hbm [thread:$0]  %s388_s8, 256, %s798_s5, [#allocation4], %s686_s30, %s686_s30, %s687_s6  }
 0x26f   :  { %682 = dma.done.wait [#allocation4], 256  }
 0x270   :  { %683 = vsyncadd [#allocation4], 4294967040 }
 0x271   :  { %397 = vsyncpa [#allocation3], 1 }
 0x272   :  { %398 = vsyncpa [#allocation6], 1 }
 0x273   :  { %399 = vsyncpa [#allocation4], 1 }

// kernel: _mlp_pallas.1
= control target key start
LH: loop header
LB: loop body
LE: loop exit
PB: predicated region body
PF: predicated region fallthrough
CT: control target
= control target key end

     0   :  { %10 = vsyncpa [#allocation3], 0  ;;  %s793_s0 = inlined_call_operand.hbm [shape: f32[16,128], index: 0, kind: input, shape index: {}]   ;;  %s794_s1 = inlined_call_operand.hbm [shape: f32[128,128], index: 1, kind: input, shape index: {}]   ;;  %s795_s2 = inlined_call_operand.vmem [shape: f32[1,128], index: 2, kind: input, shape index: {}]   ;;  %s796_s3 = inlined_call_operand.hbm [shape: f32[128,128], index: 3, kind: input, shape index: {}]   ;;  %s797_s4 = inlined_call_operand.vmem [shape: f32[1,128], index: 4, kind: input, shape index: {}]   ;;  %s798_s5 = inlined_call_operand.hbm [shape: f32[16,128], index: 5, kind: output, shape index: {}]  }
   0x1   :  { %11 = vsyncpa [#allocation6], 0 }
   0x2   :  { %12 = vsyncpa [#allocation4], 0  ;;  %s684_s18 = smov [#allocation5]   ;;  %s685_s20 = smov [#allocation2]  }
   0x3   :  { %s30_s19 = sshll.u32 %s684_s18, 4  ;;  %s18_s21 = sshll.u32 %s685_s20, 4  ;;  %s31_s19 = int_to_ptr.vmem [resolvable:$true] %s30_s19  ;;  %s720_s21 = int_to_ptr.vmem [resolvable:$true] %s18_s21 }
   0x4   :  { %s590_s24 = scalar_lea.hbm %s794_s1, 2048 }
   0x5   :  { %p591_p0 = scmp.ne.s32.totalorder %s794_s1, %s590_s24  ;;  %p594_p1 = scmp.lt.u32.totalorder %s590_s24, %s794_s1 }
   0x7   :  { %p596_p2 = pnand %p594_p1, %p591_p0 }
   0x9   :  { %599 = shalt.err (!%p596_p2)
}
   0xa   :  { %s600_s29 = scalar_lea.vmem %s31_s19, 2048  ;;  %p605_p4 = scmp.lt.s32.totalorder %s31_s19, %s31_s19 }
   0xb   :  { %p601_p3 = scmp.ne.s32.totalorder %s31_s19, %s600_s29  ;;  %p606_p5 = scmp.lt.s32.totalorder %s600_s29, %s600_s29 }
   0xd   :  { %p607_p6 = por %p606_p5, %p605_p4 }
   0xf   :  { %p608_p7 = pnand %p607_p6, %p601_p3 }
  0x11   :  { %611 = shalt.err (!%p608_p7)
}
  0x12   :  { %s686_s30 = smov 128   ;;  %s687_s6 = smov 8  }
  0x13   :  { %36 = dma.hbm_to_vmem [thread:$0]  %s794_s1, 2048, %s31_s19, [#allocation6], %s686_s30, %s686_s30, %s687_s6  }
  0x14   :  { %s612_s11 = scalar_lea.hbm %s793_s0, 256 }
  0x15   :  { %p613_p8 = scmp.ne.s32.totalorder %s793_s0, %s612_s11  ;;  %p616_p9 = scmp.lt.u32.totalorder %s612_s11, %s793_s0 }
  0x17   :  { %p618_p10 = pnand %p616_p9, %p613_p8 }
  0x19   :  { %621 = shalt.err (!%p618_p10)
}
  0x1a   :  { %s622_s16 = scalar_lea.vmem %s720_s21, 256  ;;  %p627_p12 = scmp.lt.s32.totalorder %s720_s21, %s720_s21 }
  0x1b   :  { %p623_p11 = scmp.ne.s32.totalorder %s720_s21, %s622_s16  ;;  %p628_p13 = scmp.lt.s32.totalorder %s622_s16, %s622_s16 }
  0x1d   :  { %p629_p0 = por %p628_p13, %p627_p12 }
  0x1f   :  { %p630_p1 = pnand %p629_p0, %p623_p11 }
  0x21   :  { %633 = shalt.err (!%p630_p1)
}
  0x22   :  { %24 = dma.hbm_to_vmem [thread:$0]  %s793_s0, 256, %s720_s21, [#allocation3], %s686_s30, %s686_s30, %s687_s6  }
  0x23   :  { %s688_s18 = smov [#allocation7]   ;;  %s634_s23 = scalar_lea.hbm %s796_s3, 2048 }
  0x24   :  { %s44_s19 = sshll.u32 %s688_s18, 4  ;;  %p635_p2 = scmp.ne.s32.totalorder %s796_s3, %s634_s23  ;;  %s45_s19 = int_to_ptr.vmem [resolvable:$true] %s44_s19 }
  0x25   :  { %p638_p3 = scmp.lt.u32.totalorder %s634_s23, %s796_s3 }
  0x27   :  { %p640_p4 = pnand %p638_p3, %p635_p2 }
  0x29   :  { %643 = shalt.err (!%p640_p4)
}
  0x2a   :  { %s644_s28 = scalar_lea.vmem %s45_s19, 2048  ;;  %p649_p6 = scmp.lt.s32.totalorder %s45_s19, %s45_s19 }
  0x2b   :  { %p645_p5 = scmp.ne.s32.totalorder %s45_s19, %s644_s28  ;;  %p650_p7 = scmp.lt.s32.totalorder %s644_s28, %s644_s28 }
  0x2d   :  { %p651_p8 = por %p650_p7, %p649_p6 }
  0x2f   :  { %p652_p9 = pnand %p651_p8, %p645_p5 }
  0x31   :  { %655 = shalt.err (!%p652_p9)
}
  0x32   :  { %50 = dma.hbm_to_vmem [thread:$0]  %s796_s3, 2048, %s45_s19, [#allocation6], %s686_s30, %s686_s30, %s687_s6  }
  0x33   :  { %678 = dma.done.wait [#allocation3], 256  }
  0x34   :  { %679 = vsyncadd [#allocation3], 4294967040 }
  0x35   :  { %680 = dma.done.wait [#allocation6], 4096  }
  0x36   :  { %681 = vsyncadd [#allocation6], 4294963200  ;;  %v66_v0 = vld [vmem:[#allocation5] sm:$0xff]  ;;  %v67_v1 = vld [vmem:[#allocation5 + $0x8] sm:$0xff] }
  0x37   :  { %v68_v2 = vld [vmem:[#allocation5 + $0x10] sm:$0xff]  ;;  %v512_v3 = vpack.c.bf16 %v67_v1, %v66_v0  ;;  %v69_v4 = vld [vmem:[#allocation5 + $0x18] sm:$0xff]  ;;  %v70_v6 = vld [vmem:[#allocation5 + $0x20] sm:$0xff] }
  0x38   :  { %v516_v5 = vpack.c.bf16 %v69_v4, %v68_v2  ;;  %v71_v7 = vld [vmem:[#allocation5 + $0x28] sm:$0xff]  ;;  %v64_v9 = vld [vmem:[#allocation2] sm:$0xff]  ;;  %v73_v11 = vld [vmem:[#allocation5 + $0x38] sm:$0xff] }
  0x39   :  { %513 = vmatprep.subr.bf16.mxu0 %v512_v3  ;;  %v520_v8 = vpack.c.bf16 %v71_v7, %v70_v6  ;;  %v72_v10 = vld [vmem:[#allocation5 + $0x30] sm:$0xff]  ;;  %474 = vmatprep.mubr.f32.mxu0 %v64_v9  ;;  %v74_v13 = vld [vmem:[#allocation5 + $0x40] sm:$0xff]  ;;  %v75_v14 = vld [vmem:[#allocation5 + $0x48] sm:$0xff] }
  0x3a   :  { %515 = vmatpush3.bf16.msra.mxu0 %v512_v3  ;;  %v524_v12 = vpack.c.bf16 %v73_v11, %v72_v10  ;;  %v528_v15 = vpack.c.bf16 %v75_v14, %v74_v13  ;;  %v76_v16 = vld [vmem:[#allocation5 + $0x50] sm:$0xff]  ;;  %v77_v17 = vld [vmem:[#allocation5 + $0x58] sm:$0xff]  ;;  %v78_v19 = vld [vmem:[#allocation5 + $0x60] sm:$0xff] }
  0x3b   :  { %517 = vmatprep.subr.bf16.mxu0 %v516_v5  ;;  %v532_v18 = vpack.c.bf16 %v77_v17, %v76_v16  ;;  %v79_v20 = vld [vmem:[#allocation5 + $0x68] sm:$0xff]  ;;  %v80_v22 = vld [vmem:[#allocation5 + $0x70] sm:$0xff]  ;;  %v81_v23 = vld [vmem:[#allocation5 + $0x78] sm:$0xff] }
  0x3c   :  { %v536_v21 = vpack.c.bf16 %v79_v20, %v78_v19  ;;  %v540_v24 = vpack.c.bf16 %v81_v23, %v80_v22  ;;  %v65_v25 = vld [vmem:[#allocation2 + $0x8] sm:$0xff]  ;;  %v223_v26 = vld [vmem:[#allocation7] sm:$0xff]  ;;  %v224_v27 = vld [vmem:[#allocation7 + $0x8] sm:$0xff] }
  0x3d   :  { %v544_v28 = vpack.c.bf16 %v224_v27, %v223_v26  ;;  %v225_v29 = vld [vmem:[#allocation7 + $0x10] sm:$0xff]  ;;  %v226_v30 = vld [vmem:[#allocation7 + $0x18] sm:$0xff]  ;;  %v227_v32 = vld [vmem:[#allocation7 + $0x20] sm:$0xff] }
  0x3e   :  { %519 = vmatpush3.bf16.msra.mxu0 %v516_v5  ;;  %v548_v31 = vpack.c.bf16 %v226_v30, %v225_v29  ;;  %v228_v33 = vld [vmem:[#allocation7 + $0x28] sm:$0xff]  ;;  %v229_v34 = vld [vmem:[#allocation7 + $0x30] sm:$0xff]  ;;  %v230_v36 = vld [vmem:[#allocation7 + $0x38] sm:$0xff] }
  0x3f   :  { %521 = vmatprep.subr.bf16.mxu0 %v520_v8  ;;  %545 = vmatprep.subr.bf16.mxu1 %v544_v28  ;;  %v552_v35 = vpack.c.bf16 %v228_v33, %v227_v32  ;;  %v556_v37 = vpack.c.bf16 %v230_v36, %v229_v34  ;;  %v231_v38 = vld [vmem:[#allocation7 + $0x40] sm:$0xff]  ;;  %v232_v39 = vld [vmem:[#allocation7 + $0x48] sm:$0xff]  ;;  %v233_v41 = vld [vmem:[#allocation7 + $0x50] sm:$0xff] }
  0x40   :  { %547 = vmatpush3.bf16.msra.mxu1 %v544_v28  ;;  %v560_v40 = vpack.c.bf16 %v232_v39, %v231_v38  ;;  %v234_v42 = vld [vmem:[#allocation7 + $0x58] sm:$0xff]  ;;  %v235_v44 = vld [vmem:[#allocation7 + $0x60] sm:$0xff]  ;;  %v236_v45 = vld [vmem:[#allocation7 + $0x68] sm:$0xff] }
  0x41   :  { %549 = vmatprep.subr.bf16.mxu1 %v548_v31  ;;  %v564_v43 = vpack.c.bf16 %v234_v42, %v233_v41  ;;  %v568_v46 = vpack.c.bf16 %v236_v45, %v235_v44  ;;  %v237_v47 = vld [vmem:[#allocation7 + $0x70] sm:$0xff]  ;;  %v238_v48 = vld [vmem:[#allocation7 + $0x78] sm:$0xff] }
  0x42   :  { %523 = vmatpush3.bf16.msra.mxu0 %v520_v8  ;;  %v572_v49 = vpack.c.bf16 %v238_v48, %v237_v47  ;;  %v400_v50 = vld [vmem:[%s795_s2] ss:$0 sm:$0xff] }
  0x43   :  { %525 = vmatprep.subr.bf16.mxu0 %v524_v12 }
  0x44   :  { %551 = vmatpush3.bf16.msra.mxu1 %v548_v31 }
  0x45   :  { %553 = vmatprep.subr.bf16.mxu1 %v552_v35 }
  0x46   :  { %527 = vmatpush3.bf16.msra.mxu0 %v524_v12 }
  0x47   :  { %529 = vmatprep.subr.bf16.mxu0 %v528_v15 }
  0x48   :  { %555 = vmatpush3.bf16.msra.mxu1 %v552_v35 }
  0x49   :  { %557 = vmatprep.subr.bf16.mxu1 %v556_v37 }
  0x4a   :  { %531 = vmatpush3.bf16.msra.mxu0 %v528_v15 }
  0x4b   :  { %533 = vmatprep.subr.bf16.mxu0 %v532_v18 }
  0x4c   :  { %559 = vmatpush3.bf16.msra.mxu1 %v556_v37 }
  0x4d   :  { %561 = vmatprep.subr.bf16.mxu1 %v560_v40 }
  0x4e   :  { %535 = vmatpush3.bf16.msra.mxu0 %v532_v18 }
  0x4f   :  { %537 = vmatprep.subr.bf16.mxu0 %v536_v21 }
  0x50   :  { %563 = vmatpush3.bf16.msra.mxu1 %v560_v40 }
  0x51   :  { %565 = vmatprep.subr.bf16.mxu1 %v564_v43 }
  0x52   :  { %539 = vmatpush3.bf16.msra.mxu0 %v536_v21 }
  0x53   :  { %541 = vmatprep.subr.bf16.mxu0 %v540_v24 }
  0x54   :  { %567 = vmatpush3.bf16.msra.mxu1 %v564_v43 }
  0x55   :  { %569 = vmatprep.subr.bf16.mxu1 %v568_v46 }
  0x56   :  { %543 = vmatpush3.bf16.msra.mxu0 %v540_v24 }
  0x58   :  { %571 = vmatpush3.bf16.msra.mxu1 %v568_v46 }
  0x59   :  { %475 = vmatmul.mubr.f32.vlgmr.msra.gmra.mrb[0].mxu0 %v65_v25  ;;  %573 = vmatprep.subr.bf16.mxu1 %v572_v49 }
  0x5c   :  { %575 = vmatpush3.bf16.msra.mxu1 %v572_v49  ;;  %v403_v49 = vld [vmem:[%s797_s4] ss:$0 sm:$0xff]  ;;  %s689_s4 = smov [#allocation8]  }
  0x5d   :  { %s387_s8 = sshll.u32 %s689_s4, 4  ;;  %s388_s8 = int_to_ptr.vmem [resolvable:$true] %s387_s8 }
  0x5e   :  { %s656_s9 = scalar_lea.vmem %s388_s8, 256  ;;  %p661_p11 = scmp.lt.s32.totalorder %s388_s8, %s388_s8 }
  0x5f   :  { %p657_p10 = scmp.ne.s32.totalorder %s388_s8, %s656_s9  ;;  %p662_p12 = scmp.lt.s32.totalorder %s656_s9, %s656_s9 }
  0x61   :  { %p663_p13 = por %p662_p12, %p661_p11 }
  0x63   :  { %p664_p0 = pnand %p663_p13, %p657_p10 }
 0x12c   :  { %v476_v51 = vpop.f32.mrb[0].mxu0 }
 0x12d   :  { %v160_v52 = vadd.f32 %v476_v51, %v400_v50  ;;  %v154_v53 = vpop.f32.mrb[1].mxu0 }
 0x12e   :  { %v155_v54 = vadd.f32 %v400_v50, %v154_v53 }
 0x12f   :  { %v166_v55 = vmul.f32 0.70710677, %v160_v52  ;;  %v164_v46 = vmul.f32 0.5, %v160_v52 }
 0x130   :  { %v165_v56 = vmul.f32 0.70710677, %v155_v54  ;;  %v163_v44 = vmul.f32 0.5, %v155_v54 }
 0x131   :  { %v402_v57 = vclamps-f32 %v166_v55, 3.832507 }
 0x132   :  { %v401_v58 = vclamps-f32 %v165_v56, 3.832507 }
 0x133   :  { %v172_v59 = vmul.f32 %v402_v57, %v402_v57 }
 0x134   :  { %v171_v60 = vmul.f32 %v401_v58, %v401_v58 }
 0x135   :  { %v192_v61 = vmul.f32 -1.1791603e-07, %v172_v59  ;;  %v174_v62 = vmul.f32 0.00022905065, %v172_v59 }
 0x136   :  { %v191_v63 = vmul.f32 -1.1791603e-07, %v171_v60  ;;  %v173_v0 = vmul.f32 0.00022905065, %v171_v60 }
 0x137   :  { %v194_v1 = vadd.f32 2.3547966e-05, %v192_v61  ;;  %v176_v4 = vadd.f32 0.003408291, %v174_v62 }
 0x138   :  { %v193_v2 = vadd.f32 2.3547966e-05, %v191_v63  ;;  %v175_v6 = vadd.f32 0.003408291, %v173_v0 }
 0x139   :  { %v196_v3 = vmul.f32 %v194_v1, %v172_v59  ;;  %v178_v10 = vmul.f32 %v176_v4, %v172_v59 }
 0x13a   :  { %v195_v5 = vmul.f32 %v193_v2, %v171_v60  ;;  %v177_v12 = vmul.f32 %v175_v6, %v171_v60 }
 0x13b   :  { %v198_v7 = vadd.f32 0.0010179626, %v196_v3  ;;  %v180_v16 = vadd.f32 0.050955694, %v178_v10 }
 0x13c   :  { %v197_v8 = vadd.f32 0.0010179626, %v195_v5  ;;  %v179_v18 = vadd.f32 0.050955694, %v177_v12 }
 0x13d   :  { %v200_v9 = vmul.f32 %v198_v7, %v172_v59  ;;  %v182_v22 = vmul.f32 %v180_v16, %v172_v59 }
 0x13e   :  { %v199_v11 = vmul.f32 %v197_v8, %v171_v60  ;;  %v181_v24 = vmul.f32 %v179_v18, %v171_v60 }
 0x13f   :  { %v202_v13 = vadd.f32 0.01407047, %v200_v9  ;;  %v184_v28 = vadd.f32 0.18520832, %v182_v22 }
 0x140   :  { %v201_v14 = vadd.f32 0.01407047, %v199_v11  ;;  %v183_v30 = vadd.f32 0.18520832, %v181_v24 }
 0x141   :  { %v204_v15 = vmul.f32 %v202_v13, %v172_v59  ;;  %v186_v33 = vmul.f32 %v184_v28, %v172_v59 }
 0x142   :  { %v203_v17 = vmul.f32 %v201_v14, %v171_v60  ;;  %v185_v34 = vmul.f32 %v183_v30, %v171_v60 }
 0x143   :  { %v206_v19 = vadd.f32 0.11098505, %v204_v15  ;;  %v188_v35 = vadd.f32 1.1283791, %v186_v33 }
 0x144   :  { %v205_v20 = vadd.f32 0.11098505, %v203_v17  ;;  %v187_v36 = vadd.f32 1.1283791, %v185_v34 }
 0x145   :  { %v208_v21 = vmul.f32 %v206_v19, %v172_v59  ;;  %v190_v37 = vmul.f32 %v402_v57, %v188_v35 }
 0x146   :  { %v207_v23 = vmul.f32 %v205_v20, %v171_v60  ;;  %v189_v39 = vmul.f32 %v401_v58, %v187_v36 }
 0x147   :  { %v210_v25 = vadd.f32 0.49746925, %v208_v21 }
 0x148   :  { %v209_v26 = vadd.f32 0.49746925, %v207_v23 }
 0x149   :  { %v212_v27 = vmul.f32 %v210_v25, %v172_v59 }
 0x14a   :  { %v211_v29 = vmul.f32 %v209_v26, %v171_v60 }
 0x14b   :  { %v214_v31 = vadd.f32 1.0, %v212_v27 }
 0x14c   :  { %v213_v32 = vadd.f32 1.0, %v211_v29 }
 0x14d   :  { %582 = vrcp.f32 %v214_v31 }
 0x14e   :  { %584 = vrcp.f32 %v213_v32 }
 0x157   :  { %v583_v38 = vpop.eup %582 }
 0x158   :  { %v585_v40 = vpop.eup %584  ;;  %v218_v41 = vmul.f32 %v583_v38, %v190_v37 }
 0x159   :  { %v217_v42 = vmul.f32 %v585_v40, %v189_v39 }
 0x15a   :  { %v220_v43 = vadd.f32 1.0, %v218_v41 }
 0x15b   :  { %v219_v45 = vadd.f32 1.0, %v217_v42 }
 0x15c   :  { %v222_v48 = vmul.f32 %v220_v43, %v164_v46 }
 0x15d   :  { %v221_v47 = vmul.f32 %v219_v45, %v163_v44 }
 0x15f   :  { %509 = vmatprep.mubr.f32.mxu1 %v221_v47 }
 0x160   :  { %510 = vmatmul.mubr.f32.vlgmr.msra.gmra.mrb[0].mxu1 %v222_v48 }
 0x233   :  { %v511_v50 = vpop.f32.mrb[0].mxu1 }
 0x234   :  { %v317_v51 = vadd.f32 %v511_v50, %v403_v49  ;;  %v311_v53 = vpop.f32.mrb[1].mxu1 }
 0x235   :  { %v312_v55 = vadd.f32 %v403_v49, %v311_v53 }
 0x236   :  { %v323_v56 = vmul.f32 0.70710677, %v317_v51  ;;  %v321_v42 = vmul.f32 0.5, %v317_v51 }
 0x237   :  { %v322_v57 = vmul.f32 0.70710677, %v312_v55  ;;  %v320_v44 = vmul.f32 0.5, %v312_v55 }
 0x238   :  { %v405_v58 = vclamps-f32 %v323_v56, 3.832507 }
 0x239   :  { %v404_v59 = vclamps-f32 %v322_v57, 3.832507 }
 0x23a   :  { %v329_v60 = vmul.f32 %v405_v58, %v405_v58 }
 0x23b   :  { %v328_v54 = vmul.f32 %v404_v59, %v404_v59 }
 0x23c   :  { %v349_v61 = vmul.f32 -1.1791603e-07, %v329_v60  ;;  %v331_v52 = vmul.f32 0.00022905065, %v329_v60 }
 0x23d   :  { %v348_v62 = vmul.f32 -1.1791603e-07, %v328_v54  ;;  %v330_v0 = vmul.f32 0.00022905065, %v328_v54 }
 0x23e   :  { %v351_v63 = vadd.f32 2.3547966e-05, %v349_v61  ;;  %v333_v3 = vadd.f32 0.003408291, %v331_v52 }
 0x23f   :  { %v350_v1 = vadd.f32 2.3547966e-05, %v348_v62  ;;  %v332_v6 = vadd.f32 0.003408291, %v330_v0 }
 0x240   :  { %v353_v2 = vmul.f32 %v351_v63, %v329_v60  ;;  %v335_v9 = vmul.f32 %v333_v3, %v329_v60 }
 0x241   :  { %v352_v4 = vmul.f32 %v350_v1, %v328_v54  ;;  %v334_v12 = vmul.f32 %v332_v6, %v328_v54 }
 0x242   :  { %v355_v5 = vadd.f32 0.0010179626, %v353_v2  ;;  %v337_v15 = vadd.f32 0.050955694, %v335_v9 }
 0x243   :  { %v354_v7 = vadd.f32 0.0010179626, %v352_v4  ;;  %v336_v18 = vadd.f32 0.050955694, %v334_v12 }
 0x244   :  { %v357_v8 = vmul.f32 %v355_v5, %v329_v60  ;;  %v339_v21 = vmul.f32 %v337_v15, %v329_v60 }
 0x245   :  { %v356_v10 = vmul.f32 %v354_v7, %v328_v54  ;;  %v338_v24 = vmul.f32 %v336_v18, %v328_v54 }
 0x246   :  { %v359_v11 = vadd.f32 0.01407047, %v357_v8  ;;  %v341_v27 = vadd.f32 0.18520832, %v339_v21 }
 0x247   :  { %v358_v13 = vadd.f32 0.01407047, %v356_v10  ;;  %v340_v30 = vadd.f32 0.18520832, %v338_v24 }
 0x248   :  { %v361_v14 = vmul.f32 %v359_v11, %v329_v60  ;;  %v343_v32 = vmul.f32 %v341_v27, %v329_v60 }
 0x249   :  { %v360_v16 = vmul.f32 %v358_v13, %v328_v54  ;;  %v342_v33 = vmul.f32 %v340_v30, %v328_v54 }
 0x24a   :  { %v363_v17 = vadd.f32 0.11098505, %v361_v14  ;;  %v345_v34 = vadd.f32 1.1283791, %v343_v32 }
 0x24b   :  { %v362_v19 = vadd.f32 0.11098505, %v360_v16  ;;  %v344_v35 = vadd.f32 1.1283791, %v342_v33 }
 0x24c   :  { %v365_v20 = vmul.f32 %v363_v17, %v329_v60  ;;  %v347_v36 = vmul.f32 %v405_v58, %v345_v34 }
 0x24d   :  { %v364_v22 = vmul.f32 %v362_v19, %v328_v54  ;;  %v346_v38 = vmul.f32 %v404_v59, %v344_v35 }
 0x24e   :  { %v367_v23 = vadd.f32 0.49746925, %v365_v20 }
 0x24f   :  { %v366_v25 = vadd.f32 0.49746925, %v364_v22 }
 0x250   :  { %v369_v26 = vmul.f32 %v367_v23, %v329_v60 }
 0x251   :  { %v368_v28 = vmul.f32 %v366_v25, %v328_v54 }
 0x252   :  { %v371_v29 = vadd.f32 1.0, %v369_v26 }
 0x253   :  { %v370_v31 = vadd.f32 1.0, %v368_v28 }
 0x254   :  { %586 = vrcp.f32 %v371_v29 }
 0x255   :  { %588 = vrcp.f32 %v370_v31 }
 0x25e   :  { %v587_v37 = vpop.eup %586 }
 0x25f   :  { %v589_v39 = vpop.eup %588  ;;  %v375_v40 = vmul.f32 %v587_v37, %v347_v36 }
 0x260   :  { %v374_v41 = vmul.f32 %v589_v39, %v346_v38 }
 0x261   :  { %v377_v43 = vadd.f32 1.0, %v375_v40 }
 0x262   :  { %v376_v45 = vadd.f32 1.0, %v374_v41 }
 0x263   :  { %v379_v46 = vmul.f32 %v377_v43, %v321_v42 }
 0x264   :  { %v378_v47 = vmul.f32 %v376_v45, %v320_v44 }
 0x265   :  { %381 = vst [vmem:[#allocation8 + $0x8] sm:$0xff] %v379_v46 }
 0x266   :  { %380 = vst [vmem:[#allocation8] sm:$0xff] %v378_v47 }
 0x267   :  { %667 = shalt.err (!%p664_p0)
}
 0x268   :  { %s668_s12 = scalar_lea.hbm %s798_s5, 256 }
 0x269   :  { %p669_p1 = scmp.ne.s32.totalorder %s798_s5, %s668_s12  ;;  %p672_p2 = scmp.lt.u32.totalorder %s668_s12, %s798_s5 }
 0x26b   :  { %p674_p3 = pnand %p672_p2, %p669_p1 }
 0x26d   :  { %677 = shalt.err (!%p674_p3)
}
 0x26e   :  { %393 = dma.vmem_to_hbm [thread:$0]  %s388_s8, 256, %s798_s5, [#allocation4], %s686_s30, %s686_s30, %s687_s6  }
 0x26f   :  { %682 = dma.done.wait [#allocation4], 256  }
 0x270   :  { %683 = vsyncadd [#allocation4], 4294967040 }
 0x271   :  { %397 = vsyncpa [#allocation3], 1 }
 0x272   :  { %398 = vsyncpa [#allocation6], 1 }
 0x273   :  { %399 = vsyncpa [#allocation4], 1 }

</bundles_post_ra>
